<compile_context>
chip_gen: v6e
topology: v6e:2x2x1
jax: 0.10.0
libtpu: 0.0.40
codegen_flags: <defaults>
</compile_context>

<pallas_src>
import functools

import jax
import jax.numpy as jnp
import numpy as np
from jax.experimental import pallas as pl
from jax.experimental.pallas import tpu as pltpu

_EPS = 1e-15
_LANE = 128
_MAX_BLOCK_ELEMS = 262144  # TB * TF cap -> ~1 MiB of f32 intermediates per temp


def _soft_jaccard_kernel(logits_ref, labels_ref, score_ref, inter_acc, denom_acc):
    """Grid = (batch_tiles [parallel], feature_tiles [arbitrary, innermost])."""
    f = pl.program_id(1)

    @pl.when(f == 0)
    def _():
        inter_acc[...] = jnp.zeros_like(inter_acc)
        denom_acc[...] = jnp.zeros_like(denom_acc)

    m1 = jax.nn.sigmoid(logits_ref[...].astype(jnp.float32))   # (TB, TF), EUP
    m2 = labels_ref[...].astype(jnp.float32)                   # (TB, TF)
    prod = m1 * m2

    # Two cross-lane reductions per step instead of three:
    #   s1 + s2 - intersection == sum(m1 + m2 - m1*m2)
    inter_acc[...] += jnp.sum(prod, axis=1, keepdims=True)
    denom_acc[...] += jnp.sum(m1 + m2 - prod, axis=1, keepdims=True)

    @pl.when(f == pl.num_programs(1) - 1)
    def _():
        score_ref[...] = (inter_acc[...] + _EPS) / (denom_acc[...] + _EPS)


def _sublane_multiple(dtype):
    # f32 -> 8, bf16/f16 -> 16, int8/bool/fp8 -> 32 (packed sublane tiling).
    return max(8, 32 // max(1, jnp.dtype(dtype).itemsize))


@functools.partial(jax.jit, static_argnames=("use_log",))
def soft_jaccard_loss(logits, labels, use_log: bool = False):
    """Pallas implementation of SoftJaccardLoss.forward (returns a scalar)."""
    num = logits.shape[0]
    feat = int(np.prod(logits.shape[1:]))

    logits2d = logits.reshape(num, feat)
    labels2d = labels.reshape(num, feat)

    # --- tiling -------------------------------------------------------------
    tb = max(_sublane_multiple(logits2d.dtype), _sublane_multiple(labels2d.dtype))
    tf_cap = max(_LANE, (_MAX_BLOCK_ELEMS // tb) // _LANE * _LANE)
    feat_lane = ((feat + _LANE - 1) // _LANE) * _LANE
    tf = min(feat_lane, tf_cap)

    n_pad = (-num) % tb
    f_pad = (-feat) % tf

    if n_pad or f_pad:
        # Pad logits with the most-negative value of their dtype (sigmoid -> 0)
        # and labels with 0, so padded rows / columns contribute nothing.
        if jnp.issubdtype(logits2d.dtype, jnp.floating):
            pad_logit = float(jnp.finfo(logits2d.dtype).min)
        else:
            pad_logit = int(jnp.iinfo(logits2d.dtype).min)
        logits2d = jnp.pad(logits2d, ((0, n_pad), (0, f_pad)),
                           constant_values=pad_logit)
        labels2d = jnp.pad(labels2d, ((0, n_pad), (0, f_pad)),
                           constant_values=0)

    num_pad = num + n_pad
    feat_pad = feat + f_pad
    grid = (num_pad // tb, feat_pad // tf)

    scores = pl.pallas_call(
        _soft_jaccard_kernel,
        out_shape=jax.ShapeDtypeStruct((num_pad, 1), jnp.float32),
        grid=grid,
        in_specs=[
            pl.BlockSpec((tb, tf), lambda b, f: (b, f)),
            pl.BlockSpec((tb, tf), lambda b, f: (b, f)),
        ],
        out_specs=pl.BlockSpec((tb, 1), lambda b, f: (b, 0)),
        scratch_shapes=[
            pltpu.VMEM((tb, 1), jnp.float32),   # intersection partials
            pltpu.VMEM((tb, 1), jnp.float32),   # denominator partials
        ],
        compiler_params=pltpu.CompilerParams(
            dimension_semantics=("parallel", "arbitrary"),
        ),
    )(logits2d, labels2d)

    # Finalize in the wrapper (keeps the batch grid axis parallel and drops
    # padded rows): mean over the real batch, then 1 - x or -log(x).
    jaccard = jnp.sum(scores[:num, 0]) / num
    return -jnp.log(jaccard) if use_log else 1.0 - jaccard


def soft_jaccard_loss_ref(logits, labels, use_log: bool = False):
    """Pure-JAX reference mirroring the PyTorch module exactly."""
    num = logits.shape[0]
    m1 = jax.nn.sigmoid(logits.reshape(num, -1).astype(jnp.float32))
    m2 = labels.reshape(num, -1).astype(jnp.float32)
    intersection = jnp.sum(m1 * m2, axis=1)
    score = (intersection + _EPS) / (
        jnp.sum(m1, axis=1) + jnp.sum(m2, axis=1) - intersection + _EPS
    )
    jaccard = jnp.sum(score, axis=0) / num
    return -jnp.log(jaccard) if use_log else 1.0 - jaccard


if __name__ == "__main__":
    # SoftJaccardLoss has no learnable parameters; use_log defaults to False.
    key = jax.random.PRNGKey(0)
    k_logits, k_labels = jax.random.split(key)

    N, C, H, W = 2, 4, 16, 16  # NCHW, as the PyTorch module expects
    logits = jax.random.normal(k_logits, (N, C, H, W), dtype=jnp.float32)
    labels = (jax.random.uniform(k_labels, (N, C, H, W)) > 0.5).astype(jnp.float32)

    # f32 path, both use_log settings.
    for use_log in (False, True):
        loss = soft_jaccard_loss(logits, labels, use_log=use_log)
        jax.block_until_ready(loss)
        ref = soft_jaccard_loss_ref(logits, labels, use_log=use_log)
        np.testing.assert_allclose(np.asarray(loss), np.asarray(ref),
                                   rtol=1e-5, atol=1e-6)

    # Narrow-dtype path: the kernel is HBM-bound, so bf16 logits + int8 labels
    # cut input traffic ~2.7x; the math is still done in f32 inside the kernel.
    loss_n = soft_jaccard_loss(logits.astype(jnp.bfloat16),
                               labels.astype(jnp.int8), use_log=False)
    jax.block_until_ready(loss_n)
    ref_n = soft_jaccard_loss_ref(logits.astype(jnp.bfloat16),
                                  labels.astype(jnp.int8), use_log=False)
    np.testing.assert_allclose(np.asarray(loss_n), np.asarray(ref_n),
                               rtol=1e-3, atol=1e-5)

    print("KERNEL_OK")
</pallas_src>

<mosaic_0001>
module attributes {stable_mosaic.version = 11 : i64} {
  func.func @_soft_jaccard_kernel(%arg0: i32, %arg1: i32, %arg2: memref<8x1024xf32, #tpu.memory_space<vmem>>, %arg3: memref<8x1024xf32, #tpu.memory_space<vmem>>, %arg4: memref<8x1xf32, #tpu.memory_space<vmem>>, %arg5: memref<8x1xf32, #tpu.memory_space<vmem>>, %arg6: memref<8x1xf32, #tpu.memory_space<vmem>>) attributes {dimension_semantics = [#tpu.dimension_semantics<parallel>, #tpu.dimension_semantics<arbitrary>], iteration_bounds = array<i64: 1, 1>, scalar_prefetch = 0 : i64, scratch_operands = 2 : i64, tpu.core_type = #tpu.core_type<tc>, window_params = [{transform_indices = @transform_0, window_bounds = array<i64: 8, 1024>}, {transform_indices = @transform_1, window_bounds = array<i64: 8, 1024>}, {transform_indices = @transform_2, window_bounds = array<i64: 8, 1>}]} {
    %c0_i32 = arith.constant 0 : i32
    %0 = arith.cmpi eq, %arg1, %c0_i32 : i32
    %1 = arith.extui %0 : i1 to i32
    %c0_i32_0 = arith.constant 0 : i32
    %2 = arith.cmpi ne, %1, %c0_i32_0 : i32
    scf.if %2 {
      %cst_16 = arith.constant 0.000000e+00 : f32
      %26 = vector.broadcast %cst_16 : f32 to vector<8x1xf32>
      %c0_17 = arith.constant 0 : index
      %c0_18 = arith.constant 0 : index
      %27 = vector.load %arg5[%c0_17, %c0_18] : memref<8x1xf32, #tpu.memory_space<vmem>>, vector<8x1xf32>
      tpu.vector_store %arg5[%c0_17, %c0_18], %26 {strides = array<i32>} : memref<8x1xf32, #tpu.memory_space<vmem>>, vector<8x1xf32>,
      %cst_19 = arith.constant 0.000000e+00 : f32
      %28 = vector.broadcast %cst_19 : f32 to vector<8x1xf32>
      %c0_20 = arith.constant 0 : index
      %c0_21 = arith.constant 0 : index
      %29 = vector.load %arg6[%c0_20, %c0_21] : memref<8x1xf32, #tpu.memory_space<vmem>>, vector<8x1xf32>
      tpu.vector_store %arg6[%c0_20, %c0_21], %28 {strides = array<i32>} : memref<8x1xf32, #tpu.memory_space<vmem>>, vector<8x1xf32>,
    } else {
    }
    %c0 = arith.constant 0 : index
    %c0_1 = arith.constant 0 : index
    %3 = vector.load %arg2[%c0, %c0_1] : memref<8x1024xf32, #tpu.memory_space<vmem>>, vector<8x1024xf32>
    %4 = arith.negf %3 : vector<8x1024xf32>
    %5 = math.exp %4 : vector<8x1024xf32>
    %cst = arith.constant 1.000000e+00 : f32
    %6 = vector.broadcast %cst : f32 to vector<8x1024xf32>
    %7 = arith.addf %6, %5 : vector<8x1024xf32>
    %8 = arith.divf %6, %7 : vector<8x1024xf32>
    %c0_2 = arith.constant 0 : index
    %c0_3 = arith.constant 0 : index
    %9 = vector.load %arg3[%c0_2, %c0_3] : memref<8x1024xf32, #tpu.memory_space<vmem>>, vector<8x1024xf32>
    %10 = arith.mulf %8, %9 : vector<8x1024xf32>
    %c0_4 = arith.constant 0 : index
    %c0_5 = arith.constant 0 : index
    %11 = vector.load %arg5[%c0_4, %c0_5] : memref<8x1xf32, #tpu.memory_space<vmem>>, vector<8x1xf32>
    %cst_6 = arith.constant dense<0.000000e+00> : vector<8xf32>
    %12 = vector.multi_reduction <add>, %10, %cst_6 [1] : vector<8x1024xf32> to vector<8xf32>
    %13 = vector.shape_cast %12 : vector<8xf32> to vector<8x1xf32>
    %14 = arith.addf %11, %13 : vector<8x1xf32>
    %c0_7 = arith.constant 0 : index
    %c0_8 = arith.constant 0 : index
    %15 = vector.load %arg5[%c0_7, %c0_8] : memref<8x1xf32, #tpu.memory_space<vmem>>, vector<8x1xf32>
    tpu.vector_store %arg5[%c0_7, %c0_8], %14 {strides = array<i32>} : memref<8x1xf32, #tpu.memory_space<vmem>>, vector<8x1xf32>,
    %c0_9 = arith.constant 0 : index
    %c0_10 = arith.constant 0 : index
    %16 = vector.load %arg6[%c0_9, %c0_10] : memref<8x1xf32, #tpu.memory_space<vmem>>, vector<8x1xf32>
    %17 = arith.addf %8, %9 : vector<8x1024xf32>
    %18 = arith.subf %17, %10 : vector<8x1024xf32>
    %cst_11 = arith.constant dense<0.000000e+00> : vector<8xf32>
    %19 = vector.multi_reduction <add>, %18, %cst_11 [1] : vector<8x1024xf32> to vector<8xf32>
    %20 = vector.shape_cast %19 : vector<8xf32> to vector<8x1xf32>
    %21 = arith.addf %16, %20 : vector<8x1xf32>
    %c0_12 = arith.constant 0 : index
    %c0_13 = arith.constant 0 : index
    %22 = vector.load %arg6[%c0_12, %c0_13] : memref<8x1xf32, #tpu.memory_space<vmem>>, vector<8x1xf32>
    tpu.vector_store %arg6[%c0_12, %c0_13], %21 {strides = array<i32>} : memref<8x1xf32, #tpu.memory_space<vmem>>, vector<8x1xf32>,
    %c0_i32_14 = arith.constant 0 : i32
    %23 = arith.cmpi eq, %arg1, %c0_i32_14 : i32
    %24 = arith.extui %23 : i1 to i32
    %c0_i32_15 = arith.constant 0 : i32
    %25 = arith.cmpi ne, %24, %c0_i32_15 : i32
    scf.if %25 {
      %c0_16 = arith.constant 0 : index
      %c0_17 = arith.constant 0 : index
      %26 = vector.load %arg5[%c0_16, %c0_17] : memref<8x1xf32, #tpu.memory_space<vmem>>, vector<8x1xf32>
      %cst_18 = arith.constant 1.000000e-15 : f32
      %27 = vector.broadcast %cst_18 : f32 to vector<8x1xf32>
      %28 = arith.addf %26, %27 : vector<8x1xf32>
      %c0_19 = arith.constant 0 : index
      %c0_20 = arith.constant 0 : index
      %29 = vector.load %arg6[%c0_19, %c0_20] : memref<8x1xf32, #tpu.memory_space<vmem>>, vector<8x1xf32>
      %cst_21 = arith.constant 1.000000e-15 : f32
      %30 = vector.broadcast %cst_21 : f32 to vector<8x1xf32>
      %31 = arith.addf %29, %30 : vector<8x1xf32>
      %32 = arith.divf %28, %31 : vector<8x1xf32>
      %c0_22 = arith.constant 0 : index
      %c0_23 = arith.constant 0 : index
      %33 = vector.load %arg4[%c0_22, %c0_23] : memref<8x1xf32, #tpu.memory_space<vmem>>, vector<8x1xf32>
      tpu.vector_store %arg4[%c0_22, %c0_23], %32 {strides = array<i32>} : memref<8x1xf32, #tpu.memory_space<vmem>>, vector<8x1xf32>,
    } else {
    }
    return
  }
  func.func @transform_0(%arg0: i32, %arg1: i32) -> (i32, i32) {
    %c0_i32 = arith.constant 0 : i32
    return %arg0, %arg1 : i32, i32
  }
  func.func @transform_1(%arg0: i32, %arg1: i32) -> (i32, i32) {
    %c0_i32 = arith.constant 0 : i32
    return %arg0, %arg1 : i32, i32
  }
  func.func @transform_2(%arg0: i32, %arg1: i32) -> (i32, i32) {
    %c0_i32 = arith.constant 0 : i32
    %c0_i32_0 = arith.constant 0 : i32
    return %arg0, %c0_i32 : i32, i32
  }
}

</mosaic_0001>

<bundles_post_ra>
// kernel: soft_jaccard_loss.1
= control target key start
LH: loop header
LB: loop body
LE: loop exit
PB: predicated region body
PF: predicated region fallthrough
CT: control target
= control target key end

     0   :  { %vm15_vm0 = vcmask 7168   ;;  %v188_v3 = vmov 0.0   ;;  %s260_s0 = inlined_call_operand.vmem [shape: f32[8,1024], index: 0, kind: input, shape index: {}]   ;;  %s261_s1 = inlined_call_operand.vmem [shape: f32[8,1024], index: 1, kind: input, shape index: {}]   ;;  %s262_s2 = inlined_call_operand.vmem [shape: f32[8,1], index: 2, kind: output, shape index: {}]  }
   0x1   :  { %v18_v0 = vld [vmem:[%s260_s0] sm:$0xff]  ;;  %v19_v1 = vld [vmem:[%s260_s0 + $0x8] sm:$0xff]  ;;  %v20_v2 = vld [vmem:[%s260_s0 + $0x10] sm:$0xff]  ;;  %17 = vst.msk [vmem:[#allocation3] sm:$0xff] %vm15_vm0, %v188_v3 }
   0x2   :  { %16 = vst.msk [vmem:[#allocation2] sm:$0xff] %vm15_vm0, %v188_v3  ;;  %v21_v4 = vld [vmem:[%s260_s0 + $0x18] sm:$0xff]  ;;  %v22_v5 = vld [vmem:[%s260_s0 + $0x20] sm:$0xff]  ;;  %v23_v6 = vld [vmem:[%s260_s0 + $0x28] sm:$0xff]  ;;  %v145_v7 = vmul.f32 -1.442695, %v18_v0 }
   0x3   :  { %v24_v8 = vld [vmem:[%s260_s0 + $0x30] sm:$0xff]  ;;  %v146_v9 = vmul.f32 -1.442695, %v19_v1  ;;  %v147_v10 = vmul.f32 -1.442695, %v20_v2  ;;  %v25_v11 = vld [vmem:[%s260_s0 + $0x38] sm:$0xff] }
   0x4   :  { %154 = vpow2.f32 %v145_v7  ;;  %v148_v12 = vmul.f32 -1.442695, %v21_v4  ;;  %v149_v13 = vmul.f32 -1.442695, %v22_v5  ;;  %v150_v14 = vmul.f32 -1.442695, %v23_v6 }
   0x5   :  { %156 = vpow2.f32 %v146_v9  ;;  %v151_v15 = vmul.f32 -1.442695, %v24_v8  ;;  %v152_v16 = vmul.f32 -1.442695, %v25_v11  ;;  %v74_v33 = vld [vmem:[%s261_s1] sm:$0xff]  ;;  %v75_v34 = vld [vmem:[%s261_s1 + $0x8] sm:$0xff] }
   0x6   :  { %158 = vpow2.f32 %v147_v10  ;;  %v76_v36 = vld [vmem:[%s261_s1 + $0x10] sm:$0xff]  ;;  %v77_v38 = vld [vmem:[%s261_s1 + $0x18] sm:$0xff]  ;;  %v78_v42 = vld [vmem:[%s261_s1 + $0x20] sm:$0xff] }
   0x7   :  { %160 = vpow2.f32 %v148_v12  ;;  %v79_v46 = vld [vmem:[%s261_s1 + $0x28] sm:$0xff]  ;;  %v80_v56 = vld [vmem:[%s261_s1 + $0x30] sm:$0xff]  ;;  %v81_v2 = vld [vmem:[%s261_s1 + $0x38] sm:$0xff] }
   0x8   :  { %162 = vpow2.f32 %v149_v13 }
   0x9   :  { %164 = vpow2.f32 %v150_v14 }
   0xa   :  { %166 = vpow2.f32 %v151_v15 }
   0xb   :  { %168 = vpow2.f32 %v152_v16 }
  0x11   :  { %v155_v17 = vpop.eup %154 }
  0x12   :  { %v157_v18 = vpop.eup %156  ;;  %v50_v19 = vadd.f32 1.0, %v155_v17 }
  0x13   :  { %v159_v20 = vpop.eup %158  ;;  %v51_v21 = vadd.f32 1.0, %v157_v18 }
  0x14   :  { %v161_v22 = vpop.eup %160  ;;  %v52_v23 = vadd.f32 1.0, %v159_v20  ;;  %170 = vrcp.f32 %v50_v19 }
  0x15   :  { %v163_v24 = vpop.eup %162  ;;  %v53_v25 = vadd.f32 1.0, %v161_v22  ;;  %172 = vrcp.f32 %v51_v21 }
  0x16   :  { %v165_v26 = vpop.eup %164  ;;  %v54_v27 = vadd.f32 1.0, %v163_v24  ;;  %174 = vrcp.f32 %v52_v23  ;;  %v103_v23 = vld [vmem:[#allocation3] sm:$0xff] }
  0x17   :  { %v167_v28 = vpop.eup %166  ;;  %v55_v29 = vadd.f32 1.0, %v165_v26  ;;  %176 = vrcp.f32 %v53_v25  ;;  %v90_v26 = vld [vmem:[#allocation2] sm:$0xff] }
  0x18   :  { %v169_v30 = vpop.eup %168  ;;  %v56_v31 = vadd.f32 1.0, %v167_v28  ;;  %178 = vrcp.f32 %v54_v27 }
  0x19   :  { %v57_v32 = vadd.f32 1.0, %v169_v30  ;;  %180 = vrcp.f32 %v55_v29 }
  0x1a   :  { %182 = vrcp.f32 %v56_v31 }
  0x1b   :  { %184 = vrcp.f32 %v57_v32 }
  0x21   :  { %v171_v35 = vpop.eup %170 }
  0x22   :  { %v173_v37 = vpop.eup %172  ;;  %v82_v39 = vmul.f32 %v171_v35, %v74_v33  ;;  %v104_v40 = vadd.f32 %v171_v35, %v74_v33 }
  0x23   :  { %v175_v41 = vpop.eup %174  ;;  %v83_v43 = vmul.f32 %v173_v37, %v75_v34  ;;  %v105_v44 = vadd.f32 %v173_v37, %v75_v34 }
  0x24   :  { %v177_v45 = vpop.eup %176  ;;  %v84_v47 = vmul.f32 %v175_v41, %v76_v36  ;;  %v106_v48 = vadd.f32 %v175_v41, %v76_v36  ;;  %v112_v49 = vsub.f32 %v104_v40, %v82_v39 }
  0x25   :  { %v179_v50 = vpop.eup %178  ;;  %v85_v51 = vmul.f32 %v177_v45, %v77_v38  ;;  %v107_v52 = vadd.f32 %v177_v45, %v77_v38  ;;  %v113_v53 = vsub.f32 %v105_v44, %v83_v43  ;;  %v91_v54 = vadd.f32 %v83_v43, %v82_v39 }
  0x26   :  { %v181_v55 = vpop.eup %180  ;;  %v86_v57 = vmul.f32 %v179_v50, %v78_v42  ;;  %v108_v58 = vadd.f32 %v179_v50, %v78_v42  ;;  %v114_v59 = vsub.f32 %v106_v48, %v84_v47 }
  0x27   :  { %v183_v60 = vpop.eup %182  ;;  %v87_v61 = vmul.f32 %v181_v55, %v79_v46  ;;  %v109_v62 = vadd.f32 %v181_v55, %v79_v46  ;;  %v115_v63 = vsub.f32 %v107_v52, %v85_v51  ;;  %v120_v0 = vadd.f32 %v113_v53, %v112_v49 }
  0x28   :  { %v185_v1 = vpop.eup %184  ;;  %v92_v3 = vadd.f32 %v91_v54, %v84_v47  ;;  %v88_v4 = vmul.f32 %v183_v60, %v80_v56  ;;  %v110_v5 = vadd.f32 %v183_v60, %v80_v56  ;;  %v116_v6 = vsub.f32 %v108_v58, %v86_v57 }
  0x29   :  { %v121_v7 = vadd.f32 %v120_v0, %v114_v59  ;;  %v89_v9 = vmul.f32 %v185_v1, %v81_v2  ;;  %v111_v10 = vadd.f32 %v185_v1, %v81_v2  ;;  %v117_v11 = vsub.f32 %v109_v62, %v87_v61 }
  0x2a   :  { %v93_v8 = vadd.f32 %v92_v3, %v85_v51  ;;  %v118_v14 = vsub.f32 %v110_v5, %v88_v4 }
  0x2b   :  { %v122_v12 = vadd.f32 %v121_v7, %v115_v63  ;;  %v119_v17 = vsub.f32 %v111_v10, %v89_v9 }
  0x2c   :  { %v94_v13 = vadd.f32 %v93_v8, %v86_v57 }
  0x2d   :  { %v123_v15 = vadd.f32 %v122_v12, %v116_v6 }
  0x2e   :  { %v95_v16 = vadd.f32 %v94_v13, %v87_v61 }
  0x2f   :  { %v124_v18 = vadd.f32 %v123_v15, %v117_v11 }
  0x30   :  { %v96_v20 = vadd.f32 %v95_v16, %v88_v4 }
  0x31   :  { %v125_v19 = vadd.f32 %v124_v18, %v118_v14 }
  0x32   :  { %v97_v22 = vadd.f32 %v96_v20, %v89_v9 }
  0x33   :  { %v126_v21 = vadd.f32 %v125_v19, %v119_v17 }
  0x35   :  { %127 = vadd.xlane.f32.xlu0 %v126_v21 }
  0x39   :  { %98 = vadd.xlane.f32.xlu0 %v97_v22 }
  0xbe   :  { %v128_v24 = vpop.xlane.xlu0 %127 }
  0xbf   :  { %v129_v25 = vadd.f32 %v128_v24, %v103_v23 }
  0xc1   :  { %130 = vst.msk [vmem:[#allocation3] sm:$0xff] %vm15_vm0, %v129_v25 }
  0xc2   :  { %v99_v27 = vpop.xlane.xlu0 %98 }
  0xc3   :  { %v100_v28 = vadd.f32 %v99_v27, %v90_v26 }
  0xc5   :  { %102 = vst.msk [vmem:[#allocation2] sm:$0xff] %vm15_vm0, %v100_v28 }
  0xc8   :  { %v136_v29 = vld [vmem:[#allocation3] sm:$0xff] }
  0xc9   :  { %v137_v30 = vadd.f32 1e-15, %v136_v29 }
  0xcb   :  { %186 = vrcp.f32 %v137_v30 }
  0xcc   :  { %v134_v31 = vld [vmem:[#allocation2] sm:$0xff] }
  0xcd   :  { %v135_v32 = vadd.f32 1e-15, %v134_v31 }
  0xd8   :  { %v187_v33 = vpop.eup %186 }
  0xd9   :  { %v139_v34 = vmul.f32 %v187_v33, %v135_v32 }
  0xdb   :  { %140 = vst.msk [vmem:[%s262_s2] sm:$0xff] %vm15_vm0, %v139_v34 }

</bundles_post_ra>
